<compile_context>
chip_gen: v7x
topology: tpu7x:2x2x1
jax: 0.10.0
libtpu: 0.0.40
codegen_flags: <defaults>
</compile_context>

<pallas_src>
import jax
import jax.numpy as jnp
from jax.experimental import pallas as pl
from jax.experimental.pallas import tpu as pltpu


def _round_up(x, m):
    return ((x + m - 1) // m) * m


def ffn_kernel(x_ref, w1_ref, b1_ref, w2_ref, b2_ref, o_ref, acc_ref):
    # x_ref:   (tm, d_model)      row tile (resident across the d_ff axis)
    # w1_ref:  (d_model, tf)      d_ff-chunk of W1
    # b1_ref:  (1, tf)            d_ff-chunk of b1
    # w2_ref:  (tf, d_model)      d_ff-chunk of W2
    # b2_ref:  (1, d_model)
    # o_ref:   (tm, d_model)      output tile (resident across the d_ff axis)
    # acc_ref: (tm, d_model) f32  VMEM accumulator
    j = pl.program_id(1)

    @pl.when(j == 0)
    def _():
        acc_ref[...] = jnp.zeros_like(acc_ref)

    # First matmul chunk + bias + ReLU (f32 accumulation on the MXU).
    h = jnp.dot(x_ref[...], w1_ref[...], preferred_element_type=jnp.float32)
    h = jnp.maximum(h + b1_ref[...], 0.0)

    # TODO(synk): dropout omitted (module evaluated in inference/eval mode).

    # Second matmul: accumulate this d_ff chunk's contribution.
    acc_ref[...] += jnp.dot(h.astype(w2_ref.dtype), w2_ref[...],
                            preferred_element_type=jnp.float32)

    @pl.when(j == pl.num_programs(1) - 1)
    def _():
        o_ref[...] = (acc_ref[...] + b2_ref[...]).astype(o_ref.dtype)


def position_wise_feed_forward(x, w1, b1, w2, b2, *, tm=256, tf=512):
    """x: (batch, seq, d_model) -> (batch, seq, d_model).

    Weights are stored pre-transposed vs. PyTorch: w1 (d_model, d_ff),
    w2 (d_ff, d_model).
    """
    batch, seq, d_model = x.shape
    d_ff = w1.shape[1]
    n = batch * seq

    # Row-tile alignment: 8 sublanes for f32, 16 for 16-bit dtypes.
    row_mult = 8 if x.dtype == jnp.float32 else 16

    # Clamp tiles to the (aligned) problem size.
    tm = max(row_mult, min(tm, _round_up(n, row_mult)))
    tm = _round_up(tm, row_mult)
    tf = max(128, min(tf, _round_up(d_ff, 128)))
    tf = _round_up(tf, 128)

    n_pad = _round_up(n, tm)
    dm_pad = _round_up(d_model, 128)
    dff_pad = _round_up(d_ff, tf)

    # Zero-pad (exact for this FFN: padded hidden units are ReLU(0 + 0) = 0,
    # padded W2 rows are zero, padded output columns are sliced off).
    x2d = jnp.pad(x.reshape(n, d_model),
                  ((0, n_pad - n), (0, dm_pad - d_model)))
    w1p = jnp.pad(w1, ((0, dm_pad - d_model), (0, dff_pad - d_ff)))
    b1p = jnp.pad(b1.reshape(1, d_ff), ((0, 0), (0, dff_pad - d_ff)))
    w2p = jnp.pad(w2, ((0, dff_pad - d_ff), (0, dm_pad - d_model)))
    b2p = jnp.pad(b2.reshape(1, d_model), ((0, 0), (0, dm_pad - d_model)))

    grid = (n_pad // tm, dff_pad // tf)

    out2d = pl.pallas_call(
        ffn_kernel,
        out_shape=jax.ShapeDtypeStruct((n_pad, dm_pad), x.dtype),
        grid_spec=pltpu.PrefetchScalarGridSpec(
            num_scalar_prefetch=0,
            grid=grid,
            in_specs=[
                pl.BlockSpec((tm, dm_pad), lambda i, j: (i, 0)),
                pl.BlockSpec((dm_pad, tf), lambda i, j: (0, j)),
                pl.BlockSpec((1, tf), lambda i, j: (0, j)),
                pl.BlockSpec((tf, dm_pad), lambda i, j: (j, 0)),
                pl.BlockSpec((1, dm_pad), lambda i, j: (0, 0)),
            ],
            out_specs=pl.BlockSpec((tm, dm_pad), lambda i, j: (i, 0)),
            scratch_shapes=[pltpu.VMEM((tm, dm_pad), jnp.float32)],
        ),
        compiler_params=pltpu.CompilerParams(
            dimension_semantics=("parallel", "arbitrary"),
            vmem_limit_bytes=48 * 1024 * 1024,
        ),
    )(x2d, w1p, b1p, w2p, b2p)

    return out2d[:n, :d_model].reshape(batch, seq, d_model)


def init_params(key, d_model, d_ff, dtype=jnp.float32):
    """Deterministic init mimicking nn.Linear default (uniform +-1/sqrt(fan_in))."""
    k1, k2, k3, k4 = jax.random.split(key, 4)
    bound1 = 1.0 / (d_model ** 0.5)
    bound2 = 1.0 / (d_ff ** 0.5)
    # stored pre-transposed relative to PyTorch's (out, in) weight layout
    w1 = jax.random.uniform(k1, (d_model, d_ff), dtype, -bound1, bound1)
    b1 = jax.random.uniform(k2, (d_ff,), dtype, -bound1, bound1)
    w2 = jax.random.uniform(k3, (d_ff, d_model), dtype, -bound2, bound2)
    b2 = jax.random.uniform(k4, (d_model,), dtype, -bound2, bound2)
    return w1, b1, w2, b2


def _reference(x, w1, b1, w2, b2):
    h = jnp.maximum(jnp.dot(x, w1) + b1, 0.0)
    return jnp.dot(h, w2) + b2


if __name__ == "__main__":
    key = jax.random.PRNGKey(0)

    # Case 1: lane-aligned shapes; tm/tf chosen so the grid exercises both the
    # parallel row axis and the d_ff accumulation axis (grid = (2, 2)).
    batch, seq, d_model, d_ff = 2, 64, 128, 512
    kx, kp, key = jax.random.split(key, 3)
    x = jax.random.normal(kx, (batch, seq, d_model), jnp.float32)
    w1, b1, w2, b2 = init_params(kp, d_model, d_ff)
    out = position_wise_feed_forward(x, w1, b1, w2, b2, tm=64, tf=256)
    out = jax.block_until_ready(out)
    ref = _reference(x, w1, b1, w2, b2)
    assert out.shape == (batch, seq, d_model)
    assert jnp.allclose(out, ref, atol=1e-3, rtol=1e-3), "case 1 mismatch"

    # Case 2: ragged (non-aligned) shapes -> exercises the zero-padding path.
    batch, seq, d_model, d_ff = 2, 9, 96, 144
    kx, kp = jax.random.split(key)
    x = jax.random.normal(kx, (batch, seq, d_model), jnp.float32)
    w1, b1, w2, b2 = init_params(kp, d_model, d_ff)
    out = position_wise_feed_forward(x, w1, b1, w2, b2)
    out = jax.block_until_ready(out)
    ref = _reference(x, w1, b1, w2, b2)
    assert out.shape == (batch, seq, d_model)
    assert jnp.allclose(out, ref, atol=1e-3, rtol=1e-3), "case 2 mismatch"

    print("KERNEL_OK")
</pallas_src>

<mosaic_0001>
module attributes {stable_mosaic.version = 11 : i64} {
  func.func @ffn_kernel(%arg0: i32, %arg1: i32, %arg2: memref<64x128xf32, #tpu.memory_space<vmem>>, %arg3: memref<128x256xf32, #tpu.memory_space<vmem>>, %arg4: memref<1x256xf32, #tpu.memory_space<vmem>>, %arg5: memref<256x128xf32, #tpu.memory_space<vmem>>, %arg6: memref<1x128xf32, #tpu.memory_space<vmem>>, %arg7: memref<64x128xf32, #tpu.memory_space<vmem>>, %arg8: memref<64x128xf32, #tpu.memory_space<vmem>>) attributes {dimension_semantics = [#tpu.dimension_semantics<parallel>, #tpu.dimension_semantics<arbitrary>], iteration_bounds = array<i64: 2, 2>, scalar_prefetch = 0 : i64, scratch_operands = 1 : i64, tpu.core_type = #tpu.core_type<tc>, window_params = [{transform_indices = @transform_0, window_bounds = array<i64: 64, 128>}, {transform_indices = @transform_1, window_bounds = array<i64: 128, 256>}, {transform_indices = @transform_2, window_bounds = array<i64: 1, 256>}, {transform_indices = @transform_3, window_bounds = array<i64: 256, 128>}, {pipeline_mode = #tpu.pipeline_mode<synchronous>, transform_indices = @transform_4, window_bounds = array<i64: 1, 128>}, {transform_indices = @transform_5, window_bounds = array<i64: 64, 128>}]} {
    %c0_i32 = arith.constant 0 : i32
    %0 = arith.cmpi eq, %arg1, %c0_i32 : i32
    %1 = arith.extui %0 : i1 to i32
    %c0_i32_0 = arith.constant 0 : i32
    %2 = arith.cmpi ne, %1, %c0_i32_0 : i32
    scf.if %2 {
      %cst_15 = arith.constant 0.000000e+00 : f32
      %19 = vector.broadcast %cst_15 : f32 to vector<64x128xf32>
      %c0_16 = arith.constant 0 : index
      %c0_17 = arith.constant 0 : index
      %20 = vector.load %arg8[%c0_16, %c0_17] : memref<64x128xf32, #tpu.memory_space<vmem>>, vector<64x128xf32>
      tpu.vector_store %arg8[%c0_16, %c0_17], %19 {strides = array<i32>} : memref<64x128xf32, #tpu.memory_space<vmem>>, vector<64x128xf32>,
    } else {
    }
    %c0 = arith.constant 0 : index
    %c0_1 = arith.constant 0 : index
    %3 = vector.load %arg2[%c0, %c0_1] : memref<64x128xf32, #tpu.memory_space<vmem>>, vector<64x128xf32>
    %c0_2 = arith.constant 0 : index
    %c0_3 = arith.constant 0 : index
    %4 = vector.load %arg3[%c0_2, %c0_3] : memref<128x256xf32, #tpu.memory_space<vmem>>, vector<128x256xf32>
    %cst = arith.constant dense<0.000000e+00> : vector<64x256xf32>
    %5 = tpu.matmul %3, %4, %cst {dimension_numbers = #tpu.dot_dimension_numbers<[1], [0], [0], [1], [0, 0, 1, 1], [], []>} : vector<64x128xf32>, vector<128x256xf32>, vector<64x256xf32> -> vector<64x256xf32>
    %c0_4 = arith.constant 0 : index
    %c0_5 = arith.constant 0 : index
    %6 = vector.load %arg4[%c0_4, %c0_5] : memref<1x256xf32, #tpu.memory_space<vmem>>, vector<1x256xf32>
    %7 = vector.broadcast %6 : vector<1x256xf32> to vector<64x256xf32>
    %8 = arith.addf %5, %7 : vector<64x256xf32>
    %cst_6 = arith.constant 0.000000e+00 : f32
    %9 = vector.broadcast %cst_6 : f32 to vector<64x256xf32>
    %10 = arith.maximumf %8, %9 : vector<64x256xf32>
    %c0_7 = arith.constant 0 : index
    %c0_8 = arith.constant 0 : index
    %11 = vector.load %arg8[%c0_7, %c0_8] : memref<64x128xf32, #tpu.memory_space<vmem>>, vector<64x128xf32>
    %c0_9 = arith.constant 0 : index
    %c0_10 = arith.constant 0 : index
    %12 = vector.load %arg5[%c0_9, %c0_10] : memref<256x128xf32, #tpu.memory_space<vmem>>, vector<256x128xf32>
    %cst_11 = arith.constant dense<0.000000e+00> : vector<64x128xf32>
    %13 = tpu.matmul %10, %12, %cst_11 {dimension_numbers = #tpu.dot_dimension_numbers<[1], [0], [0], [1], [0, 0, 1, 1], [], []>} : vector<64x256xf32>, vector<256x128xf32>, vector<64x128xf32> -> vector<64x128xf32>
    %14 = arith.addf %11, %13 : vector<64x128xf32>
    %c0_12 = arith.constant 0 : index
    %c0_13 = arith.constant 0 : index
    %15 = vector.load %arg8[%c0_12, %c0_13] : memref<64x128xf32, #tpu.memory_space<vmem>>, vector<64x128xf32>
    tpu.vector_store %arg8[%c0_12, %c0_13], %14 {strides = array<i32>} : memref<64x128xf32, #tpu.memory_space<vmem>>, vector<64x128xf32>,
    %c1_i32 = arith.constant 1 : i32
    %16 = arith.cmpi eq, %arg1, %c1_i32 : i32
    %17 = arith.extui %16 : i1 to i32
    %c0_i32_14 = arith.constant 0 : i32
    %18 = arith.cmpi ne, %17, %c0_i32_14 : i32
    scf.if %18 {
      %c0_15 = arith.constant 0 : index
      %c0_16 = arith.constant 0 : index
      %19 = vector.load %arg8[%c0_15, %c0_16] : memref<64x128xf32, #tpu.memory_space<vmem>>, vector<64x128xf32>
      %c0_17 = arith.constant 0 : index
      %c0_18 = arith.constant 0 : index
      %20 = vector.load %arg6[%c0_17, %c0_18] : memref<1x128xf32, #tpu.memory_space<vmem>>, vector<1x128xf32>
      %21 = vector.broadcast %20 : vector<1x128xf32> to vector<64x128xf32>
      %22 = arith.addf %19, %21 : vector<64x128xf32>
      %c0_19 = arith.constant 0 : index
      %c0_20 = arith.constant 0 : index
      %23 = vector.load %arg7[%c0_19, %c0_20] : memref<64x128xf32, #tpu.memory_space<vmem>>, vector<64x128xf32>
      tpu.vector_store %arg7[%c0_19, %c0_20], %22 {strides = array<i32>} : memref<64x128xf32, #tpu.memory_space<vmem>>, vector<64x128xf32>,
    } else {
    }
    return
  }
  func.func @transform_0(%arg0: i32, %arg1: i32) -> (i32, i32) {
    %c0_i32 = arith.constant 0 : i32
    %c0_i32_0 = arith.constant 0 : i32
    return %arg0, %c0_i32 : i32, i32
  }
  func.func @transform_1(%arg0: i32, %arg1: i32) -> (i32, i32) {
    %c0_i32 = arith.constant 0 : i32
    %c0_i32_0 = arith.constant 0 : i32
    return %c0_i32, %arg1 : i32, i32
  }
  func.func @transform_2(%arg0: i32, %arg1: i32) -> (i32, i32) {
    %c0_i32 = arith.constant 0 : i32
    %c0_i32_0 = arith.constant 0 : i32
    return %c0_i32, %arg1 : i32, i32
  }
  func.func @transform_3(%arg0: i32, %arg1: i32) -> (i32, i32) {
    %c0_i32 = arith.constant 0 : i32
    %c0_i32_0 = arith.constant 0 : i32
    return %arg1, %c0_i32 : i32, i32
  }
  func.func @transform_4(%arg0: i32, %arg1: i32) -> (i32, i32) {
    %c0_i32 = arith.constant 0 : i32
    %c0_i32_0 = arith.constant 0 : i32
    %c0_i32_1 = arith.constant 0 : i32
    return %c0_i32, %c0_i32_0 : i32, i32
  }
  func.func @transform_5(%arg0: i32, %arg1: i32) -> (i32, i32) {
    %c0_i32 = arith.constant 0 : i32
    %c0_i32_0 = arith.constant 0 : i32
    return %arg0, %c0_i32 : i32, i32
  }
}

</mosaic_0001>

<bundles_post_ra>
// kernel: tpu_custom_call.1
= control target key start
LH: loop header
LB: loop body
LE: loop exit
PB: predicated region body
PF: predicated region fallthrough
CT: control target
= control target key end

     0   :  { %s1897_s0 = inlined_call_operand.hbm [shape: f32[128,128], index: 0, kind: input, shape index: {}]   ;;  %s1898_s1 = inlined_call_operand.hbm [shape: f32[128,512], index: 1, kind: input, shape index: {}]   ;;  %s1899_s2 = inlined_call_operand.vmem [shape: f32[1,512], index: 2, kind: input, shape index: {}]   ;;  %s1900_s3 = inlined_call_operand.hbm [shape: f32[512,128], index: 3, kind: input, shape index: {}]   ;;  %s1901_s4 = inlined_call_operand.vmem [shape: f32[1,128], index: 4, kind: input, shape index: {}]   ;;  %s1902_s5 = inlined_call_operand.hbm [shape: f32[128,128], index: 5, kind: output, shape index: {}]  }
   0x1   :  { %1915 = sst [smem:[#allocation21_spill]] %s1898_s1 }
   0x2   :  { %1916 = sst [smem:[#allocation22_spill]] %s1901_s4 }
   0x3   :  { %1917 = sst [smem:[#allocation23_spill]] %s1902_s5 }
   0x4   :  { %10 = vsyncpa [#allocation4], 0 }
   0x5   :  { %12 = vsyncpa [#allocation4 + $0x1], 0 }
   0x6   :  { %13 = vsyncpa [#allocation7], 0 }
   0x7   :  { %15 = vsyncpa [#allocation7 + $0x1], 0 }
   0x8   :  { %16 = vsyncpa [#allocation5], 0 }
   0x9   :  { %18 = vsyncpa [#allocation5 + $0x1], 0  ;;  %s1427_s18 = smov 0   ;;  %s1429_s19 = smov 0  }
   0xa   :  { %s1431_s20 = smov 0   ;;  %s1433_s21 = smov 0  }
   0xb   :  { %s1435_s22 = smov 0   ;;  %s1437_s23 = smov 0  }
   0xc   :  { %s1439_s24 = smov 0   ;;  %s1441_s25 = smov 0  }
   0xd   :  { %s1443_s26 = smov 0   ;;  %s1445_s27 = smov 0  }
   0xe   :  { %s1447_s28 = smov 0  }
   0xf LB: > { %1918 = sst [smem:[#allocation13_spill]] %s1350_s20  ;;  %s33_s29 = sadd.s32 1, %s1374_s26  ;;  %s1382_s28 = sphi %s1447_s28, %s24_s28   ;;  %s1378_s27 = sphi %s1445_s27, %s1956_s27   ;;  %s1374_s26 = sphi %s1443_s26, %s1962_s26   ;;  %s1370_s25 = sphi %s1441_s25, %s1954_s25   ;;  %s1366_s24 = sphi %s1439_s24, %s1961_s24   ;;  %s1362_s23 = sphi %s1437_s23, %s1953_s23   ;;  %s1358_s22 = sphi %s1435_s22, %s1960_s22   ;;  %s1354_s21 = sphi %s1433_s21, %s1959_s21   ;;  %s1350_s20 = sphi %s1431_s20, %s1951_s20   ;;  %s1346_s19 = sphi %s1429_s19, %s1958_s19   ;;  %s1342_s18 = sphi %s1427_s18, %s1957_s18  }
  0x10   : > { %1919 = sst [smem:[#allocation14_spill]] %s1362_s23  ;;  %p1905_p0 = scmp.eq.s32.totalorder %s1382_s28, 0 }
  0x11   : > { %1920 = sst [smem:[#allocation15_spill]] %s1370_s25  ;;  %p1484_p1 = scmp.ge.s32.totalorder %s33_s29, 2 }
  0x12   : > { %1921 = sst [smem:[#allocation16_spill]] %s1378_s27  ;;  %s69_s6 = sadd.s32 1, %s1350_s20 }
  0x13   : > { %p76_p2 = scmp.ne.s32.totalorder %s1350_s20, %s1346_s19  ;;  %s1964_s29 = smov (%p1484_p1, %s33_s29), 0 }
  0x14   : > { %1923 = sst [smem:[#allocation17_spill]] %s1964_s29  ;;  %s66_s7 = ssub.s32 %s1374_s26, %s1964_s29 }
  0x15   : > { %p78_p4 = por %p76_p2, %p1905_p0  ;;  %p1904_p5 = scmp.lt.s32.totalorder %s1382_s28, 4 }
  0x16   : > { %p67_p6 = scmp.eq.s32.totalorder %s66_s7, 0  ;;  %s229_s8 = sand.u32 1, %s1382_s28  }
  0x17   : > { %s231_s9 = sand.u32 1, %s1350_s20   ;;  %s922_s12 = sshll.u32 %s1374_s26, 8 }
  0x18   : > { %s1505_s10 = scalar_select %p67_p6, %s1350_s20, %s69_s6  }
  0x19   : > { %s1507_s11 = sshll.u32 %s231_s9, 8  ;;  %s1925_s1 = sld [smem:[#allocation21_spill]] }
  0x1a   : > { %1924 = sst [smem:[#allocation18_spill]] %s1505_s10  ;;  %s233_s16 = scalar_lea.vmem [#allocation6], %s1507_s11 }
  0x1b   : > { %s240_s17 = sshll.u32 %s233_s16, 4  ;;  %p1518_p7 = pnand %p1904_p5, %p78_p4  ;;  %s1522_s17 = int_to_ptr.vmem [resolvable:$true] %s240_s17 }
  0x1c   : > { %s1525_s6 = scalar_lea.sflag [#allocation7], %s229_s8 }
  0x1d   : > { %p1906_p10 = pneg %p1518_p7 }
  0x1f   : > { %s1513_s15 = scalar_lea.hbm %s1925_s1, %s922_s12  ;;  %s1171_s14 = scalar_lea.hbm %s1925_s1, 8192 }
  0x20   : > { %s1166_s9 = scalar_lea.hbm %s1513_s15, 4096  ;;  %p1172_p13 = scmp.lt.u32.totalorder %s1513_s15, %s1925_s1 }
  0x21   : > { %p1167_p9 = scmp.ne.s32.totalorder %s1513_s15, %s1166_s9  ;;  %p1173_p2 = scmp.lt.u32.totalorder %s1171_s14, %s1166_s9 }
  0x22   : > { %p1175_p6 = scmp.lt.u32.totalorder %s1166_s9, %s1513_s15 }
  0x23   : > { %p1169_p11 = pnand %p1906_p10, %p1167_p9  ;;  %p1174_p4 = por %p1173_p2, %p1172_p13 }
  0x25   : > { %p1170_p12 = pneg %p1169_p11  ;;  %p1176_p5 = por %p1175_p6, %p1174_p4 }
  0x27   : > { %p1177_p3 = pnand %p1176_p5, %p1170_p12 }
  0x29   : > { %1180 = shalt.err (!%p1177_p3)
}
  0x2a   : > { %s1181_s8 = scalar_lea.vmem %s1522_s17, 4096  ;;  %s1384_s12 = smov [#allocation6]  }
  0x2b   : > { %p1182_p9 = scmp.ne.s32.totalorder %s1522_s17, %s1181_s8  ;;  %s1186_s13 = sshll.u32 %s1384_s12, 4  ;;  %s1187_s13 = int_to_ptr.vmem [resolvable:$false] %s1186_s13 }
  0x2c   : > { %s1188_s29 = scalar_lea.vmem %s1187_s13, 8192  ;;  %p1189_p8 = scmp.lt.s32.totalorder %s1522_s17, %s1187_s13 }
  0x2d   : > { %p1184_p11 = pnand %p1182_p9, %p1906_p10  ;;  %p1190_p13 = scmp.lt.s32.totalorder %s1188_s29, %s1181_s8 }
  0x2f   : > { %p1185_p0 = pneg %p1184_p11  ;;  %p1191_p2 = por %p1190_p13, %p1189_p8 }
  0x31   : > { %p1192_p4 = pnand %p1191_p2, %p1185_p0 }
  0x33   : > { %1195 = shalt.err (!%p1192_p4)
}
  0x34   : > { %s1385_s9 = smov 512   ;;  %s1386_s14 = smov 256  }
  0x35   : > { %s1387_s16 = smov 16   ;;  %p277_p0 = scmp.lt.s32.totalorder %s1382_s28, 5 }
  0x36   : > { %1059 = dma.hbm_to_vmem [thread:$0]  (!%p1518_p7), %s1513_s15, 4096, %s1522_s17, %s1525_s6, %s1385_s9, %s1386_s14, %s1387_s16  }
  0x37   : > { %p1927_p3 = scmp.ge.s32.totalorder %s1382_s28, 1  ;;  %s1561_s12 = sadd.s32 4294967295, %s1382_s28  }
  0x38   : > { %s895_s13 = sadd.s32 4294967294, %s1382_s28   ;;  %s36_s29 = sadd.s32 1, %s1378_s27 }
  0x39   : > { %p1556_p5 = pnand %p1927_p3, %p277_p0  ;;  %s43_s1 = sadd.s32 1, %s1362_s23 }
  0x3a   : > { %s1966_s29 = smov (!%p1484_p1, %s36_s29), %s1378_s27  ;;  %p50_p8 = scmp.ne.s32.totalorder %s1362_s23, %s1358_s22 }
  0x3b   : > { %s1928_s8 = scalar_select %p1556_p5, 1, 0 }
  0x3c   : > { %p56_p12 = scmp.ne.s32.totalorder %s1358_s22, %s1354_s21  ;;  %p38_p6 = scmp.ge.s32.totalorder %s1966_s29, 2 }
  0x3d   : > { %p57_p9 = scmp.eq.s32.totalorder %s1561_s12, 0  ;;  %p1929_p11 = scmp.eq.s32.totalorder %s1382_s28, 0 }
  0x3e   : > { %p179_p2 = scmp.eq.s32.totalorder %s1561_s12, 3  ;;  %s1968_s29 = smov (%p38_p6, %s1966_s29), 0 }
  0x3f   : > { %p1576_p13 = por %p1929_p11, %p50_p8  ;;  %1931 = sst [smem:[#allocation19_spill]] %s1968_s29 }
  0x40   : > { %p1586_p1 = por %p57_p9, %p56_p12  ;;  %p1933_p4 = scmp.ne.s32.totalorder %s1346_s19, %s1342_s18 }
  0x41   : > { %s40_s9 = ssub.s32 %s1378_s27, %s1968_s29  ;;  %p1599_p3 = por %p179_p2, %p50_p8 }
  0x42   : > { %s1932_s30 = scalar_select %p1586_p1, 1, 0 }
  0x43   : > { %p1593_p0 = por %p1933_p4, %p57_p9  ;;  %p41_p11 = scmp.eq.s32.totalorder %s40_s9, 0 }
  0x44   : > { %s1935_s14 = scalar_select %p1599_p3, 1, 0 }
  0x45   : > { %s1934_s17 = scalar_select %p1593_p0, 1, 0 }
  0x46   : > { %p185_p10 = scmp.eq.s32.totalorder %s895_s13, 3  ;;  %s208_s16 = sand.u32 1, %s1362_s23  }
  0x47   : > { %s921_s10 = sshll.u32 %s1378_s27, 10  ;;  %s898_s18 = sshll.u32 %s208_s16, 6 }
  0x48   : > { %s1606_s20 = scalar_select %p41_p11, %s1362_s23, %s43_s1  }
  0x49   : > { %p1611_p6 = por %p185_p10, %p56_p12  ;;  %s1618_s29 = scalar_lea.hbm %s1897_s0, %s921_s10 }
  0x4a   : > { %1936 = sst [smem:[#allocation20_spill]] %s1606_s20  ;;  %p1938_p8 = scmp.lt.s32.totalorder %s1382_s28, 4 }
  0x4b   : > { %s1937_s5 = scalar_select %p1611_p6, 1, 0 }
  0x4c   : > { %p1624_p9 = pnand %p1938_p8, %p1576_p13  ;;  %s212_s13 = scalar_lea.vmem [#allocation3], %s898_s18 }
  0x4d   : > { %s219_s9 = sshll.u32 %s212_s13, 4  ;;  %s1630_s27 = scalar_lea.sflag [#allocation4], %s208_s16  ;;  %s1628_s9 = int_to_ptr.vmem [resolvable:$true] %s219_s9 }
  0x4e   : > { %s1196_s4 = scalar_lea.hbm %s1618_s29, 1024  ;;  %p1198_p12 = pneg %p1624_p9 }
  0x4f   : > { %p1197_p10 = scmp.ne.s32.totalorder %s1618_s29, %s1196_s4  ;;  %s1201_s15 = scalar_lea.hbm %s1897_s0, 2048 }
  0x50   : > { %p1202_p13 = scmp.lt.u32.totalorder %s1618_s29, %s1897_s0  ;;  %p1203_p11 = scmp.lt.u32.totalorder %s1201_s15, %s1196_s4 }
  0x51   : > { %p1199_p2 = pnand %p1198_p12, %p1197_p10  ;;  %p1205_p6 = scmp.lt.u32.totalorder %s1196_s4, %s1618_s29 }
  0x52   : > { %p1204_p8 = por %p1203_p11, %p1202_p13 }
  0x53   : > { %p1200_p4 = pneg %p1199_p2 }
  0x54   : > { %p1206_p3 = por %p1205_p6, %p1204_p8 }
  0x56   : > { %p1207_p0 = pnand %p1206_p3, %p1200_p4 }
  0x58   : > { %1210 = shalt.err (!%p1207_p0)
}
  0x59   : > { %s1211_s16 = scalar_lea.vmem %s1628_s9, 1024  ;;  %s1388_s18 = smov [#allocation3]  }
  0x5a   : > { %p1212_p10 = scmp.ne.s32.totalorder %s1628_s9, %s1211_s16  ;;  %s1216_s13 = sshll.u32 %s1388_s18, 4  ;;  %s1217_s13 = int_to_ptr.vmem [resolvable:$false] %s1216_s13 }
  0x5b   : > { %s1218_s20 = scalar_lea.vmem %s1217_s13, 2048  ;;  %p1219_p5 = scmp.lt.s32.totalorder %s1628_s9, %s1217_s13 }
  0x5c   : > { %p1214_p2 = pnand %p1212_p10, %p1198_p12  ;;  %p1220_p13 = scmp.lt.s32.totalorder %s1218_s20, %s1211_s16 }
  0x5e   : > { %p1215_p1 = pneg %p1214_p2  ;;  %p1221_p11 = por %p1220_p13, %p1219_p5 }
  0x60   : > { %p1222_p6 = pnand %p1221_p11, %p1215_p1 }
  0x62   : > { %1225 = shalt.err (!%p1222_p6)
}
  0x63   : > { %s1389_s23 = smov 128   ;;  %s1390_s4 = smov 8  }
  0x64   : > { %1056 = dma.hbm_to_vmem [thread:$0]  (!%p1624_p9), %s1618_s29, 1024, %s1628_s9, %s1630_s27, %s1389_s23, %s1389_s23, %s1390_s4  }
  0x65   : > { %s923_s25 = sshll.u32 %s1374_s26, 12  ;;  %s262_s10 = scalar_lea.vmem [#allocation8], %s1507_s11 }
  0x66   : > { %s269_s15 = sshll.u32 %s262_s10, 4  ;;  %s1666_s13 = scalar_lea.hbm %s1900_s3, %s923_s25  ;;  %s1668_s15 = int_to_ptr.vmem [resolvable:$true] %s269_s15 }
  0x67   : > { %s1226_s20 = scalar_lea.hbm %s1666_s13, 4096  ;;  %p1940_p1 = pneg %p1518_p7 }
  0x68   : > { %p1227_p5 = scmp.ne.s32.totalorder %s1666_s13, %s1226_s20  ;;  %s1231_s29 = scalar_lea.hbm %s1900_s3, 8192 }
  0x69   : > { %p1232_p9 = scmp.lt.u32.totalorder %s1666_s13, %s1900_s3  ;;  %p1233_p12 = scmp.lt.u32.totalorder %s1231_s29, %s1226_s20 }
  0x6a   : > { %p1229_p0 = pnand %p1227_p5, %p1940_p1  ;;  %p1235_p8 = scmp.lt.u32.totalorder %s1226_s20, %s1666_s13 }
  0x6b   : > { %p1234_p4 = por %p1233_p12, %p1232_p9 }
  0x6c   : > { %p1230_p3 = pneg %p1229_p0 }
  0x6d   : > { %p1236_p10 = por %p1235_p8, %p1234_p4 }
  0x6f   : > { %p1237_p2 = pnand %p1236_p10, %p1230_p3 }
  0x71   : > { %1240 = shalt.err (!%p1237_p2)
}
  0x72   : > { %s1241_s25 = scalar_lea.vmem %s1668_s15, 4096  ;;  %p1941_p11 = pmov %p1940_p1 }
  0x73   : > { %p1242_p13 = scmp.ne.s32.totalorder %s1668_s15, %s1241_s25  ;;  %s1391_s10 = smov [#allocation8]  }
  0x74   : > { %s1246_s16 = sshll.u32 %s1391_s10, 4  ;;  %s1247_s16 = int_to_ptr.vmem [resolvable:$false] %s1246_s16 }
  0x75   : > { %p1244_p6 = pnand %p1242_p13, %p1941_p11  ;;  %s1248_s18 = scalar_lea.vmem %s1247_s16, 8192 }
  0x76   : > { %p1249_p1 = scmp.lt.s32.totalorder %s1668_s15, %s1247_s16  ;;  %p1250_p0 = scmp.lt.s32.totalorder %s1248_s18, %s1241_s25 }
  0x77   : > { %p1245_p5 = pneg %p1244_p6 }
  0x78   : > { %p1251_p9 = por %p1250_p0, %p1249_p1 }
  0x7a   : > { %p1252_p12 = pnand %p1251_p9, %p1245_p5 }
  0x7c   : > { %1255 = shalt.err (!%p1252_p12)
}
  0x7d   : > { %1062 = dma.hbm_to_vmem [thread:$0]  (!%p1518_p7), %s1666_s13, 4096, %s1668_s15, %s1525_s6, %s1389_s23, %s1389_s23, %s1390_s4  }
  0x7e   : > { %p1942_p3 = scmp.ne.s32.totalorder %s1928_s8, 0 }
  0x7f   : > { %s1700_s20 = sand.u32 (!%p1942_p3), 1, %s1358_s22   ;;  %p1943_p4 = scmp.ne.s32.totalorder (!%p1942_p3), %s1932_s30, 0 }
  0x80   : > { %281 = sbr.rel (%p1942_p3) target bundleno = 689 (0x2b1), region = 40  ;;  %s908_s27 = sshll.u32 (!%p1942_p3), %s1700_s20, 6 }
  0x81   : > { %s284_s11 = scalar_lea.sflag (!%p1942_p3), [#allocation4], %s1700_s20  ;;  %s1704_s29 = scalar_lea.vmem (!%p1942_p3), [#allocation3], %s908_s27 }
  0x87   : > { %1329 = dma.done.wait (%p1943_p4), %s284_s11, 1024  }
  0x88   : > { %1331 = vsyncadd (%p1943_p4), %s284_s11, 4294966272  ;;  %s292_s7 = sand.u32 1, %s1561_s12   ;;  %s294_s6 = sand.u32 1, %s1346_s19  }
  0x89   : > { %s909_s8 = sshll.u32 %s294_s6, 8  ;;  %s293_s23 = scalar_lea.sflag [#allocation7], %s292_s7 }
  0x8a   : > { %s1712_s4 = scalar_lea.vmem [#allocation6], %s909_s8  ;;  %p1944_p7 = scmp.ne.s32.totalorder %s1934_s17, 0 }
  0x8c   : > { %1333 = dma.done.wait (%p1944_p7), %s293_s23, 8192  }
  0x8d   : > { %1335 = vsyncadd (%p1944_p7), %s293_s23, 4294959104  ;;  %s912_s15 = sshll.u32 %s1366_s24, 1  ;;  %s1725_s1 = scalar_lea.vmem [#allocation8], %s909_s8 }
  0x8e   : > { %p349_p8 = scmp.lt.s32.totalorder %s912_s15, 3  ;;  %s1727_s9 = scalar_lea.vmem [#allocation9], %s908_s27 }
  0x8f   : > { %p913_p10 = scmp.ne.s32.totalorder %s1366_s24, 0 }
  0x90   : > { %s1970_s15 = smov (!%p349_p8, %s912_s15), 3  ;;  %v1392_v0 = vmov (!%p913_p10), 0.0  }
  0x91   : > { %s351_s12 = scalar_lea.vmem %s1899_s2, %s1970_s15  ;;  %358 = sbr.rel (%p913_p10) target bundleno = 152 (0x98), region = 56  ;;  %359 = vst [vmem:[#allocation2] sm:$0xff] (!%p913_p10), %v1392_v0  ;;  %360 = vst [vmem:[#allocation2 + $0x8] sm:$0xff] (!%p913_p10), %v1392_v0 }
  0x92   : > { %361 = vst [vmem:[#allocation2 + $0x10] sm:$0xff] (!%p913_p10), %v1392_v0  ;;  %362 = vst [vmem:[#allocation2 + $0x18] sm:$0xff] (!%p913_p10), %v1392_v0 }
  0x93   : > { %363 = vst [vmem:[#allocation2 + $0x20] sm:$0xff] (!%p913_p10), %v1392_v0  ;;  %364 = vst [vmem:[#allocation2 + $0x28] sm:$0xff] (!%p913_p10), %v1392_v0 }
  0x94   : > { %365 = vst [vmem:[#allocation2 + $0x30] sm:$0xff] (!%p913_p10), %v1392_v0  ;;  %366 = vst [vmem:[#allocation2 + $0x38] sm:$0xff] (!%p913_p10), %v1392_v0 }
  0x98 PF: > { %v376_v1 = vld [vmem:[%s1712_s4 + $0x8] sm:$0xff]  ;;  %v378_v2 = vld [vmem:[%s1712_s4 + $0x18] sm:$0xff]  ;;  %v375_v3 = vld [vmem:[%s1712_s4] sm:$0xff]  ;;  %v1393_v8 = vmov 0.0   ;;  %p914_p2 = scmp.ne.s32.totalorder %s1366_s24, 1 }
  0x99   : > { %v981_v4 = vpack.c.bf16 %v378_v2, %v376_v1  ;;  %v377_v5 = vld [vmem:[%s1712_s4 + $0x10] sm:$0xff]  ;;  %v380_v6 = vld [vmem:[%s1712_s4 + $0x28] sm:$0xff]  ;;  %v382_v7 = vld [vmem:[%s1712_s4 + $0x38] sm:$0xff]  ;;  %483 = vmatprep.mubr.f32.mxu0 %v1393_v8  ;;  %s1945_s18 = sld [smem:[#allocation22_spill]] (!%p914_p2) }
  0x9a   : > { %v983_v9 = vpack.c.bf16 %v377_v5, %v375_v3  ;;  %v985_v10 = vpack.c.bf16 %v382_v7, %v380_v6  ;;  %v379_v11 = vld [vmem:[%s1712_s4 + $0x20] sm:$0xff]  ;;  %v381_v12 = vld [vmem:[%s1712_s4 + $0x30] sm:$0xff]  ;;  %v384_v13 = vld [vmem:[%s1712_s4 + $0x48] sm:$0xff] }
  0x9b   : > { %982 = vmatprep.subr.bf16.mxu0 %v981_v4  ;;  %v386_v14 = vld [vmem:[%s1712_s4 + $0x58] sm:$0xff]  ;;  %v987_v15 = vpack.c.bf16 %v381_v12, %v379_v11  ;;  %v383_v17 = vld [vmem:[%s1712_s4 + $0x40] sm:$0xff]  ;;  %v385_v18 = vld [vmem:[%s1712_s4 + $0x50] sm:$0xff] }
  0x9c   : > { %984 = vmatpush1.bf16.msra.mxu0 %v983_v9  ;;  %v989_v16 = vpack.c.bf16 %v386_v14, %v384_v13  ;;  %v388_v19 = vld [vmem:[%s1712_s4 + $0x68] sm:$0xff]  ;;  %v390_v20 = vld [vmem:[%s1712_s4 + $0x78] sm:$0xff]  ;;  %v991_v21 = vpack.c.bf16 %v385_v18, %v383_v17  ;;  %v387_v23 = vld [vmem:[%s1712_s4 + $0x60] sm:$0xff] }
  0x9d   : > { %986 = vmatprep.subr.bf16.mxu0 %v985_v10  ;;  %v993_v22 = vpack.c.bf16 %v390_v20, %v388_v19  ;;  %v389_v24 = vld [vmem:[%s1712_s4 + $0x70] sm:$0xff]  ;;  %v392_v25 = vld [vmem:[%s1712_s4 + $0x88] sm:$0xff]  ;;  %v394_v26 = vld [vmem:[%s1712_s4 + $0x98] sm:$0xff] }
  0x9e   : > { %v995_v27 = vpack.c.bf16 %v389_v24, %v387_v23  ;;  %v391_v28 = vld [vmem:[%s1712_s4 + $0x80] sm:$0xff]  ;;  %v393_v29 = vld [vmem:[%s1712_s4 + $0x90] sm:$0xff]  ;;  %v396_v30 = vld [vmem:[%s1712_s4 + $0xa8] sm:$0xff]  ;;  %v997_v31 = vpack.c.bf16 %v394_v26, %v392_v25 }
  0x9f   : > { %v398_v32 = vld [vmem:[%s1712_s4 + $0xb8] sm:$0xff]  ;;  %v572_v33 = vld [vmem:[%s1725_s1 + $0x80] sm:$0xff]  ;;  %v573_v34 = vld [vmem:[%s1725_s1 + $0x88] sm:$0xff]  ;;  %v999_v43 = vpack.c.bf16 %v393_v29, %v391_v28 }
  0xa0   : > { %988 = vmatpush1.bf16.msra.mxu0 %v987_v15  ;;  %v1013_v35 = vpack.c.bf16 %v573_v34, %v572_v33  ;;  %v556_v36 = vld [vmem:[%s1725_s1] sm:$0xff]  ;;  %v557_v37 = vld [vmem:[%s1725_s1 + $0x8] sm:$0xff]  ;;  %v574_v38 = vld [vmem:[%s1725_s1 + $0x90] sm:$0xff]  ;;  %v1001_v47 = vpack.c.bf16 %v398_v32, %v396_v30 }
  0xa1   : > { %990 = vmatprep.subr.bf16.mxu0 %v989_v16  ;;  %v1015_v39 = vpack.c.bf16 %v557_v37, %v556_v36  ;;  %v575_v40 = vld [vmem:[%s1725_s1 + $0x98] sm:$0xff]  ;;  %v558_v41 = vld [vmem:[%s1725_s1 + $0x10] sm:$0xff]  ;;  %v576_v45 = vld [vmem:[%s1725_s1 + $0xa0] sm:$0xff] }
  0xa2   : > { %v559_v42 = vld [vmem:[%s1725_s1 + $0x18] sm:$0xff]  ;;  %1014 = vmatprep.subr.bf16.mxu1 %v1013_v35  ;;  %v1017_v44 = vpack.c.bf16 %v575_v40, %v574_v38  ;;  %v577_v46 = vld [vmem:[%s1725_s1 + $0xa8] sm:$0xff]  ;;  %v395_v48 = vld [vmem:[%s1712_s4 + $0xa0] sm:$0xff] }
  0xa3   : > { %v397_v49 = vld [vmem:[%s1712_s4 + $0xb0] sm:$0xff]  ;;  %v400_v50 = vld [vmem:[%s1712_s4 + $0xc8] sm:$0xff]  ;;  %1016 = vmatpush3.bf16.msra.mxu1 %v1015_v39  ;;  %v1019_v51 = vpack.c.bf16 %v559_v42, %v558_v41  ;;  %v402_v52 = vld [vmem:[%s1712_s4 + $0xd8] sm:$0xff]  ;;  %v1021_v53 = vpack.c.bf16 %v577_v46, %v576_v45 }
  0xa4   : > { %992 = vmatpush1.bf16.msra.mxu0 %v991_v21  ;;  %1018 = vmatprep.subr.bf16.mxu1 %v1017_v44  ;;  %v560_v54 = vld [vmem:[%s1725_s1 + $0x20] sm:$0xff]  ;;  %v561_v55 = vld [vmem:[%s1725_s1 + $0x28] sm:$0xff]  ;;  %v578_v56 = vld [vmem:[%s1725_s1 + $0xb0] sm:$0xff]  ;;  %v1003_v58 = vpack.c.bf16 %v397_v49, %v395_v48  ;;  %v1005_v59 = vpack.c.bf16 %v402_v52, %v400_v50 }
  0xa5   : > { %994 = vmatprep.subr.bf16.mxu0 %v993_v22  ;;  %v579_v57 = vld [vmem:[%s1725_s1 + $0xb8] sm:$0xff]  ;;  %v399_v60 = vld [vmem:[%s1712_s4 + $0xc0] sm:$0xff]  ;;  %v401_v61 = vld [vmem:[%s1712_s4 + $0xd0] sm:$0xff]  ;;  %v1023_v63 = vpack.c.bf16 %v561_v55, %v560_v54 }
  0xa6   : > { %v404_v62 = vld [vmem:[%s1712_s4 + $0xe8] sm:$0xff]  ;;  %v406_v0 = vld [vmem:[%s1712_s4 + $0xf8] sm:$0xff]  ;;  %v1025_v1 = vpack.c.bf16 %v579_v57, %v578_v56  ;;  %v562_v2 = vld [vmem:[%s1725_s1 + $0x30] sm:$0xff]  ;;  %v1007_v6 = vpack.c.bf16 %v401_v61, %v399_v60 }
  0xa7   : > { %1020 = vmatpush3.bf16.msra.mxu1 %v1019_v51  ;;  %v563_v3 = vld [vmem:[%s1725_s1 + $0x38] sm:$0xff]  ;;  %v580_v4 = vld [vmem:[%s1725_s1 + $0xc0] sm:$0xff]  ;;  %v581_v5 = vld [vmem:[%s1725_s1 + $0xc8] sm:$0xff]  ;;  %v1009_v7 = vpack.c.bf16 %v406_v0, %v404_v62 }
  0xa8   : > { %996 = vmatpush1.bf16.msra.mxu0 %v995_v27  ;;  %1022 = vmatprep.subr.bf16.mxu1 %v1021_v53  ;;  %v403_v9 = vld [vmem:[%s1712_s4 + $0xe0] sm:$0xff]  ;;  %v405_v10 = vld [vmem:[%s1712_s4 + $0xf0] sm:$0xff]  ;;  %v1027_v11 = vpack.c.bf16 %v563_v3, %v562_v2  ;;  %v1029_v12 = vpack.c.bf16 %v581_v5, %v580_v4  ;;  %v565_v14 = vld [vmem:[%s1725_s1 + $0x48] sm:$0xff] }
  0xa9   : > { %998 = vmatprep.subr.bf16.mxu0 %v997_v31  ;;  %v564_v13 = vld [vmem:[%s1725_s1 + $0x40] sm:$0xff]  ;;  %v582_v15 = vld [vmem:[%s1725_s1 + $0xd0] sm:$0xff]  ;;  %v583_v16 = vld [vmem:[%s1725_s1 + $0xd8] sm:$0xff]  ;;  %v1011_v17 = vpack.c.bf16 %v405_v10, %v403_v9 }
  0xaa   : > { %v1031_v18 = vpack.c.bf16 %v565_v14, %v564_v13  ;;  %v1033_v19 = vpack.c.bf16 %v583_v16, %v582_v15  ;;  %v566_v20 = vld [vmem:[%s1725_s1 + $0x50] sm:$0xff]  ;;  %v567_v21 = vld [vmem:[%s1725_s1 + $0x58] sm:$0xff]  ;;  %v584_v22 = vld [vmem:[%s1725_s1 + $0xe0] sm:$0xff] }
  0xab   : > { %1024 = vmatpush3.bf16.msra.mxu1 %v1023_v63  ;;  %v585_v23 = vld [vmem:[%s1725_s1 + $0xe8] sm:$0xff]  ;;  %v367_v24 = vld [vmem:[%s1704_s29] sm:$0xff]  ;;  %v1035_v25 = vpack.c.bf16 %v567_v21, %v566_v20  ;;  %v369_v28 = vld [vmem:[%s1704_s29 + $0x10] sm:$0xff] }
  0xac   : > { %1000 = vmatpush1.bf16.msra.mxu0 %v999_v43  ;;  %1026 = vmatprep.subr.bf16.mxu1 %v1025_v1  ;;  %v1037_v26 = vpack.c.bf16 %v585_v23, %v584_v22  ;;  %v368_v27 = vld [vmem:[%s1704_s29 + $0x8] sm:$0xff]  ;;  %v370_v29 = vld [vmem:[%s1704_s29 + $0x18] sm:$0xff]  ;;  %v371_v30 = vld [vmem:[%s1704_s29 + $0x20] sm:$0xff]  ;;  %v409_v43 = vlaneseq }
  0xad   : > { %1002 = vmatprep.subr.bf16.mxu0 %v1001_v47  ;;  %v372_v31 = vld [vmem:[%s1704_s29 + $0x28] sm:$0xff]  ;;  %v373_v32 = vld [vmem:[%s1704_s29 + $0x30] sm:$0xff]  ;;  %v374_v33 = vld [vmem:[%s1704_s29 + $0x38] sm:$0xff] }
  0xae   : > { %v568_v34 = vld [vmem:[%s1725_s1 + $0x60] sm:$0xff]  ;;  %v569_v35 = vld [vmem:[%s1725_s1 + $0x68] sm:$0xff]  ;;  %v586_v37 = vld [vmem:[%s1725_s1 + $0xf0] sm:$0xff]  ;;  %v410_v44 = vshrl.u32 %v409_v43, 7 }
  0xaf   : > { %1028 = vmatpush3.bf16.msra.mxu1 %v1027_v11  ;;  %v1039_v36 = vpack.c.bf16 %v569_v35, %v568_v34  ;;  %v587_v38 = vld [vmem:[%s1725_s1 + $0xf8] sm:$0xff]  ;;  %v570_v40 = vld [vmem:[%s1725_s1 + $0x70] sm:$0xff]  ;;  %v548_v35 = vld [vmem:[#allocation2] sm:$0xff] }
  0xb0   : > { %1004 = vmatpush1.bf16.msra.mxu0 %v1003_v58  ;;  %1030 = vmatprep.subr.bf16.mxu1 %v1029_v12  ;;  %v1041_v39 = vpack.c.bf16 %v587_v38, %v586_v37  ;;  %v571_v41 = vld [vmem:[%s1725_s1 + $0x78] sm:$0xff]  ;;  %v411_v45 = vsub.s32 0, %v410_v44  ;;  %v415_v46 = vsub.s32 1, %v410_v44 }
  0xb1   : > { %1006 = vmatprep.subr.bf16.mxu0 %v1005_v59  ;;  %v1043_v42 = vpack.c.bf16 %v571_v41, %v570_v40  ;;  %v549_v40 = vld [vmem:[#allocation2 + $0x8] sm:$0xff] }
  0xb3   : > { %1032 = vmatpush3.bf16.msra.mxu1 %v1031_v18 }
  0xb4   : > { %1008 = vmatpush1.bf16.msra.mxu0 %v1007_v6  ;;  %1034 = vmatprep.subr.bf16.mxu1 %v1033_v19 }
  0xb5   : > { %1010 = vmatprep.subr.bf16.mxu0 %v1009_v7 }
  0xb7   : > { %1036 = vmatpush3.bf16.msra.mxu1 %v1035_v25 }
  0xb8   : > { %1012 = vmatpush1.bf16.msra.mxu0 %v1011_v17  ;;  %1038 = vmatprep.subr.bf16.mxu1 %v1037_v26 }
  0xbb   : > { %484 = vmatmul.mubr.f32.vlgmr.msra.gmra.mrb[0].mxu0 %v367_v24  ;;  %1040 = vmatpush3.bf16.msra.mxu1 %v1039_v36 }
  0xbc   : > { %489 = vmatprep.mubr.f32.mxu0 %v1393_v8  ;;  %1042 = vmatprep.subr.bf16.mxu1 %v1041_v39 }
  0xbf   : > { %490 = vmatmul.mubr.f32.gmra.mrb[2].mxu0 %v368_v27  ;;  %1044 = vmatpush3.bf16.msra.mxu1 %v1043_v42 }
  0xc0   : > { %495 = vmatprep.mubr.f32.mxu0 %v1393_v8 }
  0xc3   : > { %496 = vmatmul.mubr.f32.gmra.mrb[4].mxu0 %v369_v28 }
  0xc4   : > { %501 = vmatprep.mubr.f32.mxu0 %v1393_v8 }
  0xc7   : > { %502 = vmatmul.mubr.f32.gmra.mrb[6].mxu0 %v370_v29 }
  0xc8   : > { %507 = vmatprep.mubr.f32.mxu0 %v1393_v8 }
  0xcb   : > { %508 = vmatmul.mubr.f32.gmra.mrb[8].mxu0 %v371_v30 }
  0xcc   : > { %513 = vmatprep.mubr.f32.mxu0 %v1393_v8 }
  0xcf   : > { %514 = vmatmul.mubr.f32.gmra.mrb[10].mxu0 %v372_v31 }
  0xd0   : > { %519 = vmatprep.mubr.f32.mxu0 %v1393_v8 }
  0xd3   : > { %520 = vmatmul.mubr.f32.gmra.mrb[12].mxu0 %v373_v32 }
  0xd4   : > { %525 = vmatprep.mubr.f32.mxu0 %v1393_v8  ;;  %v407_v8 = vld [vmem:[%s351_s12] sm:$0x3] }
  0xd5   : > { %v412_v47 = vrot.slane %v407_v8, %v411_v45  ;;  %v416_v48 = vrot.slane %v407_v8, %v415_v46  ;;  %v550_v45 = vld [vmem:[#allocation2 + $0x10] sm:$0xff] }
  0xd7   : > { %526 = vmatmul.mubr.f32.gmra.mrb[14].mxu0 %v374_v33 }
 0x18e   : > { %v485_v49 = vpop.f32.mrb[0].mxu0 }
 0x18f   : > { %v486_v50 = vadd.f32 %v485_v49, %v412_v47  ;;  %v487_v51 = vpop.f32.mrb[1].mxu0  ;;  %v551_v49 = vld [vmem:[#allocation2 + $0x18] sm:$0xff] }
 0x190   : > { %v488_v52 = vadd.f32 %v487_v51, %v416_v48 }
 0x191   : > { %v532_v55 = vmax.f32 %v486_v50, 0.0 }
 0x192   : > { %v491_v53 = vpop.f32.mrb[2].mxu0  ;;  %v533_v54 = vmax.f32 %v488_v52, 0.0 }
 0x193   : > { %v492_v56 = vadd.f32 %v491_v53, %v412_v47  ;;  %v493_v57 = vpop.f32.mrb[3].mxu0 }
 0x194   : > { %v494_v58 = vadd.f32 %v493_v57, %v416_v48  ;;  %652 = vmatprep.mubr.f32.mxu1 %v533_v54  ;;  %v552_v54 = vld [vmem:[#allocation2 + $0x20] sm:$0xff] }
 0x195   : > { %653 = vmatmul.mubr.f32.vlgmr.msra.gmra.mrb[0].mxu1 %v532_v55  ;;  %v534_v61 = vmax.f32 %v492_v56, 0.0 }
 0x196   : > { %v535_v59 = vmax.f32 %v494_v58, 0.0  ;;  %v497_v60 = vpop.f32.mrb[4].mxu0 }
 0x197   : > { %v498_v62 = vadd.f32 %v497_v60, %v412_v47  ;;  %v499_v63 = vpop.f32.mrb[5].mxu0 }
 0x198   : > { %v500_v0 = vadd.f32 %v499_v63, %v416_v48  ;;  %657 = vmatprep.mubr.f32.mxu1 %v535_v59  ;;  %v553_v59 = vld [vmem:[#allocation2 + $0x28] sm:$0xff] }
 0x199   : > { %658 = vmatmul.mubr.f32.gmra.mrb[2].mxu1 %v534_v61  ;;  %v536_v3 = vmax.f32 %v498_v62, 0.0 }
 0x19a   : > { %v537_v1 = vmax.f32 %v500_v0, 0.0  ;;  %v503_v2 = vpop.f32.mrb[6].mxu0  ;;  %v554_v0 = vld [vmem:[#allocation2 + $0x30] sm:$0xff] }
 0x19b   : > { %v504_v4 = vadd.f32 %v503_v2, %v412_v47  ;;  %v505_v5 = vpop.f32.mrb[7].mxu0 }
 0x19c   : > { %v506_v6 = vadd.f32 %v505_v5, %v416_v48  ;;  %662 = vmatprep.mubr.f32.mxu1 %v537_v1  ;;  %v555_v5 = vld [vmem:[#allocation2 + $0x38] sm:$0xff] }
 0x19d   : > { %663 = vmatmul.mubr.f32.gmra.mrb[4].mxu1 %v536_v3  ;;  %v538_v10 = vmax.f32 %v504_v4, 0.0 }
 0x19e   : > { %v539_v7 = vmax.f32 %v506_v6, 0.0  ;;  %v509_v9 = vpop.f32.mrb[8].mxu0 }
 0x19f   : > { %v510_v11 = vadd.f32 %v509_v9, %v412_v47  ;;  %v511_v12 = vpop.f32.mrb[9].mxu0 }
 0x1a0   : > { %v512_v13 = vadd.f32 %v511_v12, %v416_v48  ;;  %667 = vmatprep.mubr.f32.mxu1 %v539_v7 }
 0x1a1   : > { %668 = vmatmul.mubr.f32.gmra.mrb[6].mxu1 %v538_v10  ;;  %v540_v16 = vmax.f32 %v510_v11, 0.0  ;;  %v915_v11 = vld [vmem:[%s1945_s18] ss:$0 sm:$0xff] (!%p914_p2) }
 0x1a2   : > { %v541_v14 = vmax.f32 %v512_v13, 0.0  ;;  %v515_v15 = vpop.f32.mrb[10].mxu0 }
 0x1a3   : > { %v516_v17 = vadd.f32 %v515_v15, %v412_v47  ;;  %v517_v18 = vpop.f32.mrb[11].mxu0 }
 0x1a4   : > { %v518_v19 = vadd.f32 %v517_v18, %v416_v48  ;;  %672 = vmatprep.mubr.f32.mxu1 %v541_v14 }
 0x1a5   : > { %673 = vmatmul.mubr.f32.gmra.mrb[8].mxu1 %v540_v16  ;;  %v542_v22 = vmax.f32 %v516_v17, 0.0 }
 0x1a6   : > { %v543_v20 = vmax.f32 %v518_v19, 0.0  ;;  %v521_v21 = vpop.f32.mrb[12].mxu0 }
 0x1a7   : > { %v522_v23 = vadd.f32 %v521_v21, %v412_v47  ;;  %v523_v24 = vpop.f32.mrb[13].mxu0 }
 0x1a8   : > { %v524_v25 = vadd.f32 %v523_v24, %v416_v48  ;;  %677 = vmatprep.mubr.f32.mxu1 %v543_v20 }
 0x1a9   : > { %678 = vmatmul.mubr.f32.gmra.mrb[10].mxu1 %v542_v22  ;;  %v544_v28 = vmax.f32 %v522_v23, 0.0 }
 0x1aa   : > { %v545_v26 = vmax.f32 %v524_v25, 0.0  ;;  %v527_v27 = vpop.f32.mrb[14].mxu0 }
 0x1ab   : > { %v528_v29 = vadd.f32 %v527_v27, %v412_v47  ;;  %v529_v30 = vpop.f32.mrb[15].mxu0 }
 0x1ac   : > { %v530_v31 = vadd.f32 %v529_v30, %v416_v48  ;;  %682 = vmatprep.mubr.f32.mxu1 %v545_v26 }
 0x1ad   : > { %683 = vmatmul.mubr.f32.gmra.mrb[12].mxu1 %v544_v28  ;;  %v546_v33 = vmax.f32 %v528_v29, 0.0 }
 0x1ae   : > { %v547_v32 = vmax.f32 %v530_v31, 0.0 }
 0x1b0   : > { %687 = vmatprep.mubr.f32.mxu1 %v547_v32 }
 0x1b1   : > { %688 = vmatmul.mubr.f32.gmra.mrb[14].mxu1 %v546_v33 }
 0x268   : > { %v957_v34 = vpop.f32.mrb[0].mxu1 }
 0x269   : > { %v958_v36 = vpop.f32.mrb[1].mxu1 }
 0x26a   : > { %v959_v37 = vadd.f32 %v958_v36, %v957_v34 }
 0x26c   : > { %v693_v38 = vadd.f32 %v959_v37, %v548_v35  ;;  %v960_v39 = vpop.f32.mrb[2].mxu1 }
 0x26d   : > { %v961_v41 = vpop.f32.mrb[3].mxu1 }
 0x26e   : > { %701 = vst [vmem:[#allocation2] sm:$0xff] %v693_v38  ;;  %v962_v42 = vadd.f32 %v961_v41, %v960_v39 }
 0x270   : > { %v694_v43 = vadd.f32 %v962_v42, %v549_v40  ;;  %v963_v44 = vpop.f32.mrb[4].mxu1 }
 0x271   : > { %v964_v8 = vpop.f32.mrb[5].mxu1 }
 0x272   : > { %702 = vst [vmem:[#allocation2 + $0x8] sm:$0xff] %v694_v43  ;;  %v965_v46 = vadd.f32 %v964_v8, %v963_v44 }
 0x274   : > { %v695_v47 = vadd.f32 %v965_v46, %v550_v45  ;;  %v966_v48 = vpop.f32.mrb[6].mxu1 }
 0x275   : > { %v967_v50 = vpop.f32.mrb[7].mxu1  ;;  %v713_v10 = vld [vmem:[#allocation2] sm:$0xff] (!%p914_p2) }
 0x276   : > { %703 = vst [vmem:[#allocation2 + $0x10] sm:$0xff] %v695_v47  ;;  %v968_v51 = vadd.f32 %v967_v50, %v966_v48  ;;  %v728_v13 = vadd.f32 (!%p914_p2), %v915_v11, %v713_v10 }
 0x278   : > { %v696_v52 = vadd.f32 %v968_v51, %v551_v49  ;;  %v969_v53 = vpop.f32.mrb[8].mxu1  ;;  %736 = vst [vmem:[%s1727_s9] sm:$0xff] (!%p914_p2), %v728_v13 }
 0x279   : > { %v970_v55 = vpop.f32.mrb[9].mxu1  ;;  %v714_v12 = vld [vmem:[#allocation2 + $0x8] sm:$0xff] (!%p914_p2) }
 0x27a   : > { %704 = vst [vmem:[#allocation2 + $0x18] sm:$0xff] %v696_v52  ;;  %v971_v56 = vadd.f32 %v970_v55, %v969_v53  ;;  %v729_v14 = vadd.f32 (!%p914_p2), %v915_v11, %v714_v12 }
 0x27c   : > { %v697_v57 = vadd.f32 %v971_v56, %v552_v54  ;;  %v972_v58 = vpop.f32.mrb[10].mxu1  ;;  %737 = vst [vmem:[%s1727_s9 + $0x8] sm:$0xff] (!%p914_p2), %v729_v14 }
 0x27d   : > { %v973_v60 = vpop.f32.mrb[11].mxu1  ;;  %v715_v15 = vld [vmem:[#allocation2 + $0x10] sm:$0xff] (!%p914_p2) }
 0x27e   : > { %705 = vst [vmem:[#allocation2 + $0x20] sm:$0xff] %v697_v57  ;;  %v974_v61 = vadd.f32 %v973_v60, %v972_v58  ;;  %v730_v18 = vadd.f32 (!%p914_p2), %v915_v11, %v715_v15 }
 0x280   : > { %v698_v62 = vadd.f32 %v974_v61, %v553_v59  ;;  %v975_v63 = vpop.f32.mrb[12].mxu1  ;;  %738 = vst [vmem:[%s1727_s9 + $0x10] sm:$0xff] (!%p914_p2), %v730_v18 }
 0x281   : > { %v976_v1 = vpop.f32.mrb[13].mxu1  ;;  %v716_v16 = vld [vmem:[#allocation2 + $0x18] sm:$0xff] (!%p914_p2) }
 0x282   : > { %706 = vst [vmem:[#allocation2 + $0x28] sm:$0xff] %v698_v62  ;;  %v977_v2 = vadd.f32 %v976_v1, %v975_v63  ;;  %v731_v19 = vadd.f32 (!%p914_p2), %v915_v11, %v716_v16 }
 0x284   : > { %v699_v3 = vadd.f32 %v977_v2, %v554_v0  ;;  %v978_v4 = vpop.f32.mrb[14].mxu1  ;;  %712 = sbr.rel (%p914_p2) target bundleno = 661 (0x295), region = 60  ;;  %739 = vst [vmem:[%s1727_s9 + $0x18] sm:$0xff] (!%p914_p2), %v731_v19 }
 0x285   : > { %v979_v6 = vpop.f32.mrb[15].mxu1  ;;  %v717_v17 = vld [vmem:[#allocation2 + $0x20] sm:$0xff] (!%p914_p2) }
 0x286   : > { %707 = vst [vmem:[#allocation2 + $0x30] sm:$0xff] %v699_v3  ;;  %v980_v7 = vadd.f32 %v979_v6, %v978_v4  ;;  %v732_v20 = vadd.f32 (!%p914_p2), %v915_v11, %v717_v17 }
 0x288   : > { %v700_v9 = vadd.f32 %v980_v7, %v555_v5  ;;  %740 = vst [vmem:[%s1727_s9 + $0x20] sm:$0xff] (!%p914_p2), %v732_v20 }
 0x289   : > { %v718_v21 = vld [vmem:[#allocation2 + $0x28] sm:$0xff] (!%p914_p2) }
 0x28a   : > { %708 = vst [vmem:[#allocation2 + $0x38] sm:$0xff] %v700_v9  ;;  %v733_v24 = vadd.f32 (!%p914_p2), %v915_v11, %v718_v21 }
 0x28c   : > { %741 = vst [vmem:[%s1727_s9 + $0x28] sm:$0xff] %v733_v24 }
 0x28d   : > { %v719_v22 = vld [vmem:[#allocation2 + $0x30] sm:$0xff] }
 0x28e   : > { %v734_v25 = vadd.f32 %v915_v11, %v719_v22 }
 0x290   : > { %742 = vst [vmem:[%s1727_s9 + $0x30] sm:$0xff] %v734_v25 }
 0x291   : > { %v720_v23 = vld [vmem:[#allocation2 + $0x38] sm:$0xff] }
 0x292   : > { %v735_v26 = vadd.f32 %v915_v11, %v720_v23 }
 0x294   : > { %743 = vst [vmem:[%s1727_s9 + $0x38] sm:$0xff] %v735_v26 }
 0x295 PF: > { %s1946_s24 = sld [smem:[#allocation15_spill]]  ;;  %s758_s8 = sshll.u32 %s1727_s9, 4  ;;  %s1834_s8 = int_to_ptr.vmem [resolvable:$true] %s758_s8 }
 0x296   : > { %s1947_s7 = sld [smem:[#allocation23_spill]]  ;;  %s745_s23 = scalar_lea.sflag [#allocation5], %s1700_s20 }
 0x297   : > { %s1256_s4 = scalar_lea.vmem %s1834_s8, 1024  ;;  %p1948_p11 = scmp.ne.s32.totalorder %s1935_s14, 0 }
 0x298   : > { %p1257_p13 = scmp.ne.s32.totalorder %s1834_s8, %s1256_s4  ;;  %s1394_s15 = smov [#allocation9]  }
 0x299   : > { %s1260_s30 = sshll.u32 %s1394_s15, 4  ;;  %s1261_s30 = int_to_ptr.vmem [resolvable:$false] %s1260_s30 }
 0x29a   : > { %p1258_p6 = pnand %p1257_p13, %p1948_p11  ;;  %s1262_s13 = scalar_lea.vmem %s1261_s30, 2048 }
 0x29b   : > { %s924_s27 = sshll.u32 %s1946_s24, 10  ;;  %p1263_p1 = scmp.lt.s32.totalorder %s1834_s8, %s1261_s30 }
 0x29c   : > { %s1831_s6 = scalar_lea.hbm %s1947_s7, %s924_s27  ;;  %p1259_p5 = pneg %p1258_p6 }
 0x29d   : > { %p1264_p0 = scmp.lt.s32.totalorder %s1262_s13, %s1256_s4 }
 0x29f   : > { %p1265_p9 = por %p1264_p0, %p1263_p1 }
 0x2a1   : > { %p1266_p12 = pnand %p1265_p9, %p1259_p5 }
 0x2a3   : > { %1269 = shalt.err (!%p1266_p12)
}
 0x2a4   : > { %s1270_s12 = scalar_lea.hbm %s1831_s6, 1024  ;;  %s1274_s17 = scalar_lea.hbm %s1947_s7, 2048 }
 0x2a5   : > { %p1271_p3 = scmp.ne.s32.totalorder %s1831_s6, %s1270_s12  ;;  %p1275_p8 = scmp.lt.u32.totalorder %s1831_s6, %s1947_s7 }
 0x2a6   : > { %p1276_p10 = scmp.lt.u32.totalorder %s1274_s17, %s1270_s12  ;;  %p1278_p13 = scmp.lt.u32.totalorder %s1270_s12, %s1831_s6 }
 0x2a7   : > { %p1272_p4 = pnand %p1271_p3, %p1948_p11 }
 0x2a8   : > { %p1277_p2 = por %p1276_p10, %p1275_p8 }
 0x2a9   : > { %p1273_p7 = pneg %p1272_p4 }
 0x2aa   : > { %p1279_p6 = por %p1278_p13, %p1277_p2 }
 0x2ac   : > { %p1280_p5 = pnand %p1279_p6, %p1273_p7 }
 0x2ae   : > { %1283 = shalt.err (!%p1280_p5)
}
 0x2af   : > { %s1395_s16 = smov 128   ;;  %s1396_s18 = smov 8  }
 0x2b0   : > { %1051 = dma.vmem_to_hbm [thread:$0]  (%p1948_p11), %s1834_s8, 1024, %s1831_s6, %s745_s23, %s1395_s16, %s1395_s16, %s1396_s18  }
 0x2b1 PF: > { %p1068_p1 = scmp.ge.s32.totalorder %s1382_s28, 2  ;;  %s773_s24 = sand.u32 1, %s1354_s21  }
 0x2b2   : > { %p1949_p0 = scmp.ne.s32.totalorder %s1937_s5, 0  ;;  %s774_s27 = scalar_lea.sflag [#allocation5], %s773_s24 }
 0x2b4   : > { %p1064_p9 = pnand %p1068_p1, %p1949_p0 }
 0x2b6   : > { %1337 = dma.done.wait (!%p1064_p9), %s774_s27, 1024  }
 0x2b7   : > { %1339 = vsyncadd (!%p1064_p9), %s774_s27, 4294966272  ;;  %s24_s28 = sadd.s32 1, %s1382_s28   ;;  %s1950_s11 = sld [smem:[#allocation13_spill]] }
 0x2b8   : > { %p21_p12 = scmp.ge.s32.totalorder %s24_s28, 6   ;;  %s1951_s20 = sld [smem:[#allocation18_spill]] }
 0x2b9   : > { %s1952_s14 = sld [smem:[#allocation14_spill]]  ;;  %s1953_s23 = sld [smem:[#allocation20_spill]] }
 0x2ba   : > { %s1954_s25 = sld [smem:[#allocation16_spill]]  ;;  %s1955_s29 = sld [smem:[#allocation17_spill]] }
 0x2bb   : > { %s1956_s27 = sld [smem:[#allocation19_spill]]  ;;  %s1957_s18 = smov %s1346_s19 }
 0x2bc   : > { %s1959_s21 = smov %s1358_s22  ;;  %s1961_s24 = smov %s1374_s26 }
 0x2bd   : > { %s1958_s19 = smov %s1950_s11  ;;  %23 = sbr.rel (!%p21_p12) target bundleno = 15 (0xf), region = 120 }
 0x2bf   : > { %s1960_s22 = smov %s1952_s14 }
 0x2c0   : > { %s1962_s26 = smov %s1955_s29 }
 0x2c4   :  { %779 = vsyncpa [#allocation4], 1 }
 0x2c5   :  { %781 = vsyncpa [#allocation4 + $0x1], 1 }
 0x2c6   :  { %782 = vsyncpa [#allocation7], 1 }
 0x2c7   :  { %784 = vsyncpa [#allocation7 + $0x1], 1 }
 0x2c8   :  { %785 = vsyncpa [#allocation5], 1 }
 0x2c9   :  { %787 = vsyncpa [#allocation5 + $0x1], 1 }

</bundles_post_ra>
